<compile_context>
chip_gen: v5e
topology: v5e:2x2
jax: 0.10.0
libtpu: 0.0.40
codegen_flags: <defaults>
</compile_context>

<pallas_src>
import functools

import jax
import jax.numpy as jnp
import numpy as np
from jax.experimental import pallas as pl
from jax.experimental.pallas import tpu as pltpu


def _round_up(x, m):
    return ((x + m - 1) // m) * m


def _cdiv(a, b):
    return -(-a // b)


# ----------------------------------------------------------------------------
# Fused weight / bias construction.
#   y_i = flat(x_i) @ W_big + b_big, columns:
#     [0, F)      features        f_i                 (bias b_feat)
#     [F, 2F)     clustering diff f_i - f_aug_i       (feature biases cancel)
#     2F          flat(x_i) . w_dist_top              (bias 0)
#     2F + 1      flat(x_i) . w_dist_bot              (bias b_dist)
#     [2F+2, N)   zero padding to a lane-dense multiple of 128
#   so distanceModel(x_i, x_j) = y_i[:, 2F] + y_j[:, 2F+1].
# ----------------------------------------------------------------------------
def build_fused_weights(w_feat, b_feat, w_dist, b_dist, img_shape):
    CHW, F = w_feat.shape
    C, H, W = img_shape
    # flat(flip_W(x)) @ w  ==  flat(x) @ w_flip  for a width flip.
    w_flip = w_feat.reshape(C, H, W, F)[:, :, ::-1, :].reshape(CHW, F)
    w_clust = w_feat - w_flip
    w_top, w_bot = w_dist[:CHW], w_dist[CHW:]
    n_used = 2 * F + 2
    n_pad = _round_up(n_used, 128)
    w_big = jnp.concatenate(
        [w_feat, w_clust, w_top, w_bot,
         jnp.zeros((CHW, n_pad - n_used), w_feat.dtype)], axis=1)
    b_big = jnp.concatenate(
        [b_feat.reshape(1, F),
         jnp.zeros((1, F), jnp.float32),
         jnp.zeros((1, 1), jnp.float32),
         b_dist.reshape(1, 1),
         jnp.zeros((1, n_pad - n_used), jnp.float32)], axis=1)
    # bf16 weights: single-pass MXU matmuls, half the (re-)stream bytes.
    return w_big.astype(jnp.bfloat16), b_big.astype(jnp.float32)


# ----------------------------------------------------------------------------
# The fused kernel: 3 projections + full loss epilogue per batch tile.
# ----------------------------------------------------------------------------
def _fused_distance_loss_kernel(params_ref, x1_ref, x2_ref, x3_ref, w_ref,
                                b_ref, o_ref, y1_acc, y2_acc, y3_acc,
                                *, feat_dim, batch, block_b, k_rem):
    i = pl.program_id(0)               # batch tile (parallel axis)
    k = pl.program_id(1)               # contraction tile (reduction axis)
    nk = pl.num_programs(1)

    x1 = x1_ref[...].astype(jnp.bfloat16)
    x2 = x2_ref[...].astype(jnp.bfloat16)
    x3 = x3_ref[...].astype(jnp.bfloat16)
    w = w_ref[...]

    if k_rem:                          # static: last K tile is partial
        tk = x1.shape[1]
        limit = jnp.where(k == nk - 1, k_rem, tk)
        col_ok = jax.lax.broadcasted_iota(jnp.int32, (1, tk), 1) < limit
        row_ok = jax.lax.broadcasted_iota(jnp.int32, (tk, 1), 0) < limit
        x1 = jnp.where(col_ok, x1, 0)
        x2 = jnp.where(col_ok, x2, 0)
        x3 = jnp.where(col_ok, x3, 0)
        w = jnp.where(row_ok, w, 0)

    p1 = jnp.dot(x1, w, preferred_element_type=jnp.float32)
    p2 = jnp.dot(x2, w, preferred_element_type=jnp.float32)
    p3 = jnp.dot(x3, w, preferred_element_type=jnp.float32)

    @pl.when(k == 0)                   # overwrite on first K step
    def _():
        y1_acc[...] = p1
        y2_acc[...] = p2
        y3_acc[...] = p3

    @pl.when(k > 0)
    def _():
        y1_acc[...] += p1
        y2_acc[...] += p2
        y3_acc[...] += p3

    @pl.when(k == nk - 1)              # loss epilogue, once per batch tile
    def _():
        delta = params_ref[0:1, 0:1]   # [1,1] broadcastable scalars
        lamda = params_ref[0:1, 1:2]
        bias = b_ref[...]
        y1 = y1_acc[...] + bias
        y2 = y2_acc[...] + bias
        y3 = y3_acc[...] + bias

        F = feat_dim
        inv_f = 1.0 / F
        f1, c1 = y1[:, 0:F], y1[:, F:2 * F]
        f2, c2 = y2[:, 0:F], y2[:, F:2 * F]
        f3, c3 = y3[:, 0:F], y3[:, F:2 * F]

        def msq(d):                    # torch mse per-sample over features
            return jnp.sum(d * d, axis=-1, keepdims=True) * inv_f

        dist12 = msq(f1 - f2)
        dist13 = msq(f1 - f3)
        dist23 = msq(f2 - f3)
        # featsLossClust: the 3 mseLoss(f_i, fa_i) terms share divisor B*F;
        # c_i = f_i - fa_i comes straight from the matmul (flip folded in W).
        clust_ps = jnp.sum(c1 * c1 + c2 * c2 + c3 * c3,
                           axis=-1, keepdims=True) * inv_f

        c = 2 * F
        pt1, pb1 = y1[:, c:c + 1], y1[:, c + 1:c + 2]
        pt2, pb2 = y2[:, c:c + 1], y2[:, c + 1:c + 2]
        pt3, pb3 = y3[:, c:c + 1], y3[:, c + 1:c + 2]

        d11, d12, d13 = pt1 + pb1, pt1 + pb2, pt1 + pb3
        d21, d22, d23 = pt2 + pb1, pt2 + pb2, pt2 + pb3
        d31, d32, d33 = pt3 + pb1, pt3 + pb2, pt3 + pb3

        sq = lambda v: v * v
        rl = lambda v: jnp.maximum(v, 0.0)        # torch.clamp(x, min=0)

        feats_ps = (sq(dist12 - d12) + sq(dist13 - d13) + sq(dist23 - d23)
                    + clust_ps)
        dist_ps = (
            sq(d11) + sq(d22) + sq(d33)                            # Id
            + sq(d12 - d21) + sq(d13 - d31) + sq(d23 - d32)        # Symm
            + sq(rl(delta - d12)) + sq(rl(delta - d13))            # Delta
            + sq(rl(delta - d23)) + sq(rl(delta - d21))
            + sq(rl(delta - d32)) + sq(rl(delta - d31))
            + sq(rl(d13 - d12 - d23)) + sq(rl(d31 - d32 - d21))    # Ineq
            + sq(rl(d23 - d21 - d13)) + sq(rl(d32 - d31 - d12))
            + sq(rl(d12 - d13 - d32)) + sq(rl(d21 - d23 - d31)))

        per_sample = feats_ps + lamda * dist_ps                    # [tb, 1]

        # Mask rows past the true batch (only hit when block_b doesn't divide B).
        row = jax.lax.broadcasted_iota(jnp.int32, (block_b, 1), 0) + i * block_b
        per_sample = jnp.where(row < batch, per_sample, 0.0)

        tile_loss = jnp.sum(per_sample) * (1.0 / batch)
        o_ref[...] = jnp.full(o_ref.shape, tile_loss, dtype=o_ref.dtype)


# ----------------------------------------------------------------------------
# Tile selection: sized for the smallest VMEM generation (v7x, 64 MiB).
# ----------------------------------------------------------------------------
def _choose_tiles(B, K, N):
    # Batch tile: a single full-B tile for small B; otherwise >= 2 blocks so
    # the "parallel" axis shards across v7x's two TensorCores.
    if B <= 128:
        tb = B
    else:
        tb = min(256, _round_up(_cdiv(B, 2), 8))
    nb = _cdiv(B, tb)

    # Contraction tile: as large as a conservative 20 MiB VMEM budget allows.
    budget = 20 * 1024 * 1024
    fixed = 3 * tb * N * 4 + 4 * N * 4            # y accumulators + bias/params
    per_tk = 3 * 2 * tb * 4 + 2 * N * 2           # 3 dbl-buffered x tiles + bf16 W tile
    tk_cap = max(128, (budget - fixed) // per_tk)
    if tk_cap >= K:
        tk = K                                    # W fully resident, single K step
    else:
        tk = min(max(512, (tk_cap // 128) * 128), K)
    nk = _cdiv(K, tk)
    k_rem = K % tk if nk > 1 else 0
    return tb, nb, tk, nk, k_rem


# ----------------------------------------------------------------------------
# Forward wrapper.
# ----------------------------------------------------------------------------
def distance_loss_forward(delta, lamda, input1, input2, input3,
                          w_feat, b_feat, w_dist, b_dist):
    # TODO(synk): featsModel / distanceModel architectures and
    # random_augmentation are undefined upstream; linear stand-ins and a
    # deterministic horizontal flip (folded into the fused weights) are used.
    B = input1.shape[0]
    K = int(np.prod(input1.shape[1:]))
    F = w_feat.shape[1]

    w_big, b_big = build_fused_weights(w_feat, b_feat, w_dist, b_dist,
                                       input1.shape[1:])
    N = w_big.shape[1]

    # Flattening is a free row-major view; activations are NOT pre-cast,
    # concatenated or padded in the wrapper (each would be an extra HBM pass)
    # -- the kernel reads them once and casts to bf16 in VMEM.
    x1 = input1.reshape(B, K)
    x2 = input2.reshape(B, K)
    x3 = input3.reshape(B, K)

    params = jnp.zeros((1, 128), jnp.float32)
    params = params.at[0, 0].set(jnp.asarray(delta, jnp.float32))
    params = params.at[0, 1].set(jnp.asarray(lamda, jnp.float32))

    tb, nb, tk, nk, k_rem = _choose_tiles(B, K, N)

    partials = pl.pallas_call(
        functools.partial(_fused_distance_loss_kernel,
                          feat_dim=F, batch=B, block_b=tb, k_rem=k_rem),
        out_shape=jax.ShapeDtypeStruct((nb, 1, 128), jnp.float32),
        grid_spec=pltpu.PrefetchScalarGridSpec(
            num_scalar_prefetch=0,
            grid=(nb, nk),
            in_specs=[
                pl.BlockSpec((1, 128), lambda i, k: (0, 0)),   # delta / lamda
                pl.BlockSpec((tb, tk), lambda i, k: (i, k)),   # x1
                pl.BlockSpec((tb, tk), lambda i, k: (i, k)),   # x2
                pl.BlockSpec((tb, tk), lambda i, k: (i, k)),   # x3
                pl.BlockSpec((tk, N), lambda i, k: (k, 0)),    # W_big (resident if nk==1)
                pl.BlockSpec((1, N), lambda i, k: (0, 0)),     # b_big
            ],
            out_specs=pl.BlockSpec((1, 1, 128), lambda i, k: (i, 0, 0)),
            scratch_shapes=[pltpu.VMEM((tb, N), jnp.float32)] * 3,
        ),
        compiler_params=pltpu.CompilerParams(
            dimension_semantics=("parallel", "arbitrary"),
            vmem_limit_bytes=32 * 1024 * 1024,
        ),
    )(params, x1, x2, x3, w_big, b_big)

    # Tiny epilogue: sum nb per-tile partial means (each already divided by B).
    return jnp.sum(partials[:, 0, 0])


# ----------------------------------------------------------------------------
# Pure-JAX reference following the ORIGINAL (unfused) module structure.
# ----------------------------------------------------------------------------
def _reference_forward(delta, lamda, x1, x2, x3, w_feat, b_feat, w_dist, b_dist):
    hp = jax.lax.Precision.HIGHEST
    flat = lambda x: x.reshape(x.shape[0], -1)
    feats = lambda x: jnp.dot(flat(x), w_feat, precision=hp) + b_feat
    aug = lambda x: x[..., ::-1]

    def dmodel(a, b):
        xy = jnp.concatenate([flat(a), flat(b)], axis=1)
        return (jnp.dot(xy, w_dist, precision=hp) + b_dist)[:, 0]

    mse_loss = lambda a, b: jnp.mean((a - b) ** 2, axis=1)   # per-sample
    mseLoss = lambda a, b: jnp.mean((a - b) ** 2)
    rl = lambda v: jnp.maximum(v, 0.0)

    f1, f1a = feats(x1), feats(aug(x1))
    f2, f2a = feats(x2), feats(aug(x2))
    f3, f3a = feats(x3), feats(aug(x3))
    dist12, dist13, dist23 = mse_loss(f1, f2), mse_loss(f1, f3), mse_loss(f2, f3)

    d12, d21 = dmodel(x1, x2), dmodel(x2, x1)
    d13, d31 = dmodel(x1, x3), dmodel(x3, x1)
    d23, d32 = dmodel(x2, x3), dmodel(x3, x2)
    d11, d22, d33 = dmodel(x1, x1), dmodel(x2, x2), dmodel(x3, x3)
    z = jnp.zeros_like(d11)

    featsLoss = (mseLoss(dist12, d12) + mseLoss(dist13, d13) + mseLoss(dist23, d23)
                 + mseLoss(f1, f1a) + mseLoss(f2, f2a) + mseLoss(f3, f3a))
    distLoss = (mseLoss(d11, z) + mseLoss(d22, z) + mseLoss(d33, z)
                + mseLoss(d12, d21) + mseLoss(d13, d31) + mseLoss(d23, d32)
                + mseLoss(rl(delta - d12), z) + mseLoss(rl(delta - d13), z)
                + mseLoss(rl(delta - d23), z) + mseLoss(rl(delta - d21), z)
                + mseLoss(rl(delta - d32), z) + mseLoss(rl(delta - d31), z)
                + mseLoss(rl(d13 - d12 - d23), z) + mseLoss(rl(d31 - d32 - d21), z)
                + mseLoss(rl(d23 - d21 - d13), z) + mseLoss(rl(d32 - d31 - d12), z)
                + mseLoss(rl(d12 - d13 - d32), z) + mseLoss(rl(d21 - d23 - d31), z))
    return featsLoss + lamda * distLoss


if __name__ == "__main__":
    B, C, H, W = 4, 4, 8, 8
    F = 32
    CHW = C * H * W
    delta = 1.0
    lamda = 0.5

    key = jax.random.PRNGKey(0)
    k1, k2, k3, kw, kb, kwd, kbd = jax.random.split(key, 7)
    input1 = jax.random.normal(k1, (B, C, H, W), dtype=jnp.float32)
    input2 = jax.random.normal(k2, (B, C, H, W), dtype=jnp.float32)
    input3 = jax.random.normal(k3, (B, C, H, W), dtype=jnp.float32)

    # Deterministic synthetic model parameters (linear stand-ins).
    w_feat = 0.05 * jax.random.normal(kw, (CHW, F), dtype=jnp.float32)
    b_feat = 0.01 * jax.random.normal(kb, (1, F), dtype=jnp.float32)
    w_dist = 0.05 * jax.random.normal(kwd, (2 * CHW, 1), dtype=jnp.float32)
    b_dist = 0.01 * jax.random.normal(kbd, (1, 1), dtype=jnp.float32)

    fwd = jax.jit(distance_loss_forward)
    loss = jax.block_until_ready(
        fwd(delta, lamda, input1, input2, input3,
            w_feat, b_feat, w_dist, b_dist))

    ref = _reference_forward(delta, lamda, input1, input2, input3,
                             w_feat, b_feat, w_dist, b_dist)
    # bf16 MXU operands (f32 accumulation) vs. f32-highest reference.
    np.testing.assert_allclose(np.asarray(loss), np.asarray(ref),
                               rtol=3e-2, atol=3e-2)

    print("KERNEL_OK")
</pallas_src>

<mosaic_0001>
module attributes {stable_mosaic.version = 11 : i64} {
  func.func @_fused_distance_loss_kernel(%arg0: i32, %arg1: i32, %arg2: memref<1x128xf32, #tpu.memory_space<vmem>>, %arg3: memref<4x256xf32, #tpu.memory_space<vmem>>, %arg4: memref<4x256xf32, #tpu.memory_space<vmem>>, %arg5: memref<4x256xf32, #tpu.memory_space<vmem>>, %arg6: memref<256x128xbf16, #tpu.memory_space<vmem>>, %arg7: memref<1x128xf32, #tpu.memory_space<vmem>>, %arg8: memref<1x1x128xf32, #tpu.memory_space<vmem>>, %arg9: memref<4x128xf32, #tpu.memory_space<vmem>>, %arg10: memref<4x128xf32, #tpu.memory_space<vmem>>, %arg11: memref<4x128xf32, #tpu.memory_space<vmem>>) attributes {dimension_semantics = [#tpu.dimension_semantics<parallel>, #tpu.dimension_semantics<arbitrary>], iteration_bounds = array<i64: 1, 1>, scalar_prefetch = 0 : i64, scratch_operands = 3 : i64, tpu.core_type = #tpu.core_type<tc>, window_params = [{pipeline_mode = #tpu.pipeline_mode<synchronous>, transform_indices = @transform_0, window_bounds = array<i64: 1, 128>}, {transform_indices = @transform_1, window_bounds = array<i64: 4, 256>}, {transform_indices = @transform_2, window_bounds = array<i64: 4, 256>}, {transform_indices = @transform_3, window_bounds = array<i64: 4, 256>}, {transform_indices = @transform_4, window_bounds = array<i64: 256, 128>}, {pipeline_mode = #tpu.pipeline_mode<synchronous>, transform_indices = @transform_5, window_bounds = array<i64: 1, 128>}, {transform_indices = @transform_6, window_bounds = array<i64: 1, 1, 128>}]} {
    %c0 = arith.constant 0 : index
    %c0_0 = arith.constant 0 : index
    %0 = vector.load %arg3[%c0, %c0_0] : memref<4x256xf32, #tpu.memory_space<vmem>>, vector<4x256xf32>
    %1 = arith.truncf %0 : vector<4x256xf32> to vector<4x256xbf16>
    %c0_1 = arith.constant 0 : index
    %c0_2 = arith.constant 0 : index
    %2 = vector.load %arg4[%c0_1, %c0_2] : memref<4x256xf32, #tpu.memory_space<vmem>>, vector<4x256xf32>
    %3 = arith.truncf %2 : vector<4x256xf32> to vector<4x256xbf16>
    %c0_3 = arith.constant 0 : index
    %c0_4 = arith.constant 0 : index
    %4 = vector.load %arg5[%c0_3, %c0_4] : memref<4x256xf32, #tpu.memory_space<vmem>>, vector<4x256xf32>
    %5 = arith.truncf %4 : vector<4x256xf32> to vector<4x256xbf16>
    %c0_5 = arith.constant 0 : index
    %c0_6 = arith.constant 0 : index
    %6 = vector.load %arg6[%c0_5, %c0_6] : memref<256x128xbf16, #tpu.memory_space<vmem>>, vector<256x128xbf16>
    %cst = arith.constant dense<0.000000e+00> : vector<4x128xf32>
    %7 = tpu.matmul %1, %6, %cst {dimension_numbers = #tpu.dot_dimension_numbers<[1], [0], [0], [1], [0, 0, 1, 1], [], []>} : vector<4x256xbf16>, vector<256x128xbf16>, vector<4x128xf32> -> vector<4x128xf32>
    %cst_7 = arith.constant dense<0.000000e+00> : vector<4x128xf32>
    %8 = tpu.matmul %3, %6, %cst_7 {dimension_numbers = #tpu.dot_dimension_numbers<[1], [0], [0], [1], [0, 0, 1, 1], [], []>} : vector<4x256xbf16>, vector<256x128xbf16>, vector<4x128xf32> -> vector<4x128xf32>
    %cst_8 = arith.constant dense<0.000000e+00> : vector<4x128xf32>
    %9 = tpu.matmul %5, %6, %cst_8 {dimension_numbers = #tpu.dot_dimension_numbers<[1], [0], [0], [1], [0, 0, 1, 1], [], []>} : vector<4x256xbf16>, vector<256x128xbf16>, vector<4x128xf32> -> vector<4x128xf32>
    %c0_i32 = arith.constant 0 : i32
    %10 = arith.cmpi eq, %arg1, %c0_i32 : i32
    %11 = arith.extui %10 : i1 to i32
    %c0_i32_9 = arith.constant 0 : i32
    %12 = arith.cmpi ne, %11, %c0_i32_9 : i32
    scf.if %12 {
      %c0_14 = arith.constant 0 : index
      %c0_15 = arith.constant 0 : index
      %19 = vector.load %arg9[%c0_14, %c0_15] : memref<4x128xf32, #tpu.memory_space<vmem>>, vector<4x128xf32>
      tpu.vector_store %arg9[%c0_14, %c0_15], %7 {strides = array<i32>} : memref<4x128xf32, #tpu.memory_space<vmem>>, vector<4x128xf32>,
      %c0_16 = arith.constant 0 : index
      %c0_17 = arith.constant 0 : index
      %20 = vector.load %arg10[%c0_16, %c0_17] : memref<4x128xf32, #tpu.memory_space<vmem>>, vector<4x128xf32>
      tpu.vector_store %arg10[%c0_16, %c0_17], %8 {strides = array<i32>} : memref<4x128xf32, #tpu.memory_space<vmem>>, vector<4x128xf32>,
      %c0_18 = arith.constant 0 : index
      %c0_19 = arith.constant 0 : index
      %21 = vector.load %arg11[%c0_18, %c0_19] : memref<4x128xf32, #tpu.memory_space<vmem>>, vector<4x128xf32>
      tpu.vector_store %arg11[%c0_18, %c0_19], %9 {strides = array<i32>} : memref<4x128xf32, #tpu.memory_space<vmem>>, vector<4x128xf32>,
    } else {
    }
    %c0_i32_10 = arith.constant 0 : i32
    %13 = arith.cmpi sgt, %arg1, %c0_i32_10 : i32
    %14 = arith.extui %13 : i1 to i32
    %c0_i32_11 = arith.constant 0 : i32
    %15 = arith.cmpi ne, %14, %c0_i32_11 : i32
    scf.if %15 {
      %c0_14 = arith.constant 0 : index
      %c0_15 = arith.constant 0 : index
      %19 = vector.load %arg9[%c0_14, %c0_15] : memref<4x128xf32, #tpu.memory_space<vmem>>, vector<4x128xf32>
      %20 = arith.addf %19, %7 : vector<4x128xf32>
      %c0_16 = arith.constant 0 : index
      %c0_17 = arith.constant 0 : index
      %21 = vector.load %arg9[%c0_16, %c0_17] : memref<4x128xf32, #tpu.memory_space<vmem>>, vector<4x128xf32>
      tpu.vector_store %arg9[%c0_16, %c0_17], %20 {strides = array<i32>} : memref<4x128xf32, #tpu.memory_space<vmem>>, vector<4x128xf32>,
      %c0_18 = arith.constant 0 : index
      %c0_19 = arith.constant 0 : index
      %22 = vector.load %arg10[%c0_18, %c0_19] : memref<4x128xf32, #tpu.memory_space<vmem>>, vector<4x128xf32>
      %23 = arith.addf %22, %8 : vector<4x128xf32>
      %c0_20 = arith.constant 0 : index
      %c0_21 = arith.constant 0 : index
      %24 = vector.load %arg10[%c0_20, %c0_21] : memref<4x128xf32, #tpu.memory_space<vmem>>, vector<4x128xf32>
      tpu.vector_store %arg10[%c0_20, %c0_21], %23 {strides = array<i32>} : memref<4x128xf32, #tpu.memory_space<vmem>>, vector<4x128xf32>,
      %c0_22 = arith.constant 0 : index
      %c0_23 = arith.constant 0 : index
      %25 = vector.load %arg11[%c0_22, %c0_23] : memref<4x128xf32, #tpu.memory_space<vmem>>, vector<4x128xf32>
      %26 = arith.addf %25, %9 : vector<4x128xf32>
      %c0_24 = arith.constant 0 : index
      %c0_25 = arith.constant 0 : index
      %27 = vector.load %arg11[%c0_24, %c0_25] : memref<4x128xf32, #tpu.memory_space<vmem>>, vector<4x128xf32>
      tpu.vector_store %arg11[%c0_24, %c0_25], %26 {strides = array<i32>} : memref<4x128xf32, #tpu.memory_space<vmem>>, vector<4x128xf32>,
    } else {
    }
    %c0_i32_12 = arith.constant 0 : i32
    %16 = arith.cmpi eq, %arg1, %c0_i32_12 : i32
    %17 = arith.extui %16 : i1 to i32
    %c0_i32_13 = arith.constant 0 : i32
    %18 = arith.cmpi ne, %17, %c0_i32_13 : i32
    scf.if %18 {
      %c0_14 = arith.constant 0 : index
      %c0_15 = arith.constant 0 : index
      %19 = vector.load %arg2[%c0_14, %c0_15] : memref<1x128xf32, #tpu.memory_space<vmem>>, vector<1x1xf32>
      %c0_16 = arith.constant 0 : index
      %c1 = arith.constant 1 : index
      %20 = vector.load %arg2[%c0_16, %c1] : memref<1x128xf32, #tpu.memory_space<vmem>>, vector<1x1xf32>
      %c0_17 = arith.constant 0 : index
      %c0_18 = arith.constant 0 : index
      %21 = vector.load %arg7[%c0_17, %c0_18] : memref<1x128xf32, #tpu.memory_space<vmem>>, vector<1x128xf32>
      %c0_19 = arith.constant 0 : index
      %c0_20 = arith.constant 0 : index
      %22 = vector.load %arg9[%c0_19, %c0_20] : memref<4x128xf32, #tpu.memory_space<vmem>>, vector<4x128xf32>
      %23 = vector.broadcast %21 : vector<1x128xf32> to vector<4x128xf32>
      %24 = arith.addf %22, %23 : vector<4x128xf32>
      %c0_21 = arith.constant 0 : index
      %c0_22 = arith.constant 0 : index
      %25 = vector.load %arg10[%c0_21, %c0_22] : memref<4x128xf32, #tpu.memory_space<vmem>>, vector<4x128xf32>
      %26 = vector.broadcast %21 : vector<1x128xf32> to vector<4x128xf32>
      %27 = arith.addf %25, %26 : vector<4x128xf32>
      %c0_23 = arith.constant 0 : index
      %c0_24 = arith.constant 0 : index
      %28 = vector.load %arg11[%c0_23, %c0_24] : memref<4x128xf32, #tpu.memory_space<vmem>>, vector<4x128xf32>
      %29 = vector.broadcast %21 : vector<1x128xf32> to vector<4x128xf32>
      %30 = arith.addf %28, %29 : vector<4x128xf32>
      %31 = vector.extract_strided_slice %24 {offsets = [0, 0], sizes = [4, 32], strides = [1, 1]} : vector<4x128xf32> to vector<4x32xf32>
      %32 = vector.extract_strided_slice %24 {offsets = [0, 32], sizes = [4, 32], strides = [1, 1]} : vector<4x128xf32> to vector<4x32xf32>
      %33 = vector.extract_strided_slice %27 {offsets = [0, 0], sizes = [4, 32], strides = [1, 1]} : vector<4x128xf32> to vector<4x32xf32>
      %34 = vector.extract_strided_slice %27 {offsets = [0, 32], sizes = [4, 32], strides = [1, 1]} : vector<4x128xf32> to vector<4x32xf32>
      %35 = vector.extract_strided_slice %30 {offsets = [0, 0], sizes = [4, 32], strides = [1, 1]} : vector<4x128xf32> to vector<4x32xf32>
      %36 = vector.extract_strided_slice %30 {offsets = [0, 32], sizes = [4, 32], strides = [1, 1]} : vector<4x128xf32> to vector<4x32xf32>
      %37 = arith.subf %31, %33 : vector<4x32xf32>
      %38 = arith.mulf %37, %37 : vector<4x32xf32>
      %cst_25 = arith.constant dense<0.000000e+00> : vector<4xf32>
      %39 = vector.multi_reduction <add>, %38, %cst_25 [1] : vector<4x32xf32> to vector<4xf32>
      %40 = vector.shape_cast %39 : vector<4xf32> to vector<4x1xf32>
      %cst_26 = arith.constant 3.125000e-02 : f32
      %41 = vector.broadcast %cst_26 : f32 to vector<4x1xf32>
      %42 = arith.mulf %40, %41 : vector<4x1xf32>
      %43 = arith.subf %31, %35 : vector<4x32xf32>
      %44 = arith.mulf %43, %43 : vector<4x32xf32>
      %cst_27 = arith.constant dense<0.000000e+00> : vector<4xf32>
      %45 = vector.multi_reduction <add>, %44, %cst_27 [1] : vector<4x32xf32> to vector<4xf32>
      %46 = vector.shape_cast %45 : vector<4xf32> to vector<4x1xf32>
      %cst_28 = arith.constant 3.125000e-02 : f32
      %47 = vector.broadcast %cst_28 : f32 to vector<4x1xf32>
      %48 = arith.mulf %46, %47 : vector<4x1xf32>
      %49 = arith.subf %33, %35 : vector<4x32xf32>
      %50 = arith.mulf %49, %49 : vector<4x32xf32>
      %cst_29 = arith.constant dense<0.000000e+00> : vector<4xf32>
      %51 = vector.multi_reduction <add>, %50, %cst_29 [1] : vector<4x32xf32> to vector<4xf32>
      %52 = vector.shape_cast %51 : vector<4xf32> to vector<4x1xf32>
      %cst_30 = arith.constant 3.125000e-02 : f32
      %53 = vector.broadcast %cst_30 : f32 to vector<4x1xf32>
      %54 = arith.mulf %52, %53 : vector<4x1xf32>
      %55 = arith.mulf %32, %32 : vector<4x32xf32>
      %56 = arith.mulf %34, %34 : vector<4x32xf32>
      %57 = arith.addf %55, %56 : vector<4x32xf32>
      %58 = arith.mulf %36, %36 : vector<4x32xf32>
      %59 = arith.addf %57, %58 : vector<4x32xf32>
      %cst_31 = arith.constant dense<0.000000e+00> : vector<4xf32>
      %60 = vector.multi_reduction <add>, %59, %cst_31 [1] : vector<4x32xf32> to vector<4xf32>
      %61 = vector.shape_cast %60 : vector<4xf32> to vector<4x1xf32>
      %cst_32 = arith.constant 3.125000e-02 : f32
      %62 = vector.broadcast %cst_32 : f32 to vector<4x1xf32>
      %63 = arith.mulf %61, %62 : vector<4x1xf32>
      %64 = vector.extract_strided_slice %24 {offsets = [0, 64], sizes = [4, 1], strides = [1, 1]} : vector<4x128xf32> to vector<4x1xf32>
      %65 = vector.extract_strided_slice %24 {offsets = [0, 65], sizes = [4, 1], strides = [1, 1]} : vector<4x128xf32> to vector<4x1xf32>
      %66 = vector.extract_strided_slice %27 {offsets = [0, 64], sizes = [4, 1], strides = [1, 1]} : vector<4x128xf32> to vector<4x1xf32>
      %67 = vector.extract_strided_slice %27 {offsets = [0, 65], sizes = [4, 1], strides = [1, 1]} : vector<4x128xf32> to vector<4x1xf32>
      %68 = vector.extract_strided_slice %30 {offsets = [0, 64], sizes = [4, 1], strides = [1, 1]} : vector<4x128xf32> to vector<4x1xf32>
      %69 = vector.extract_strided_slice %30 {offsets = [0, 65], sizes = [4, 1], strides = [1, 1]} : vector<4x128xf32> to vector<4x1xf32>
      %70 = arith.addf %64, %65 : vector<4x1xf32>
      %71 = arith.addf %64, %67 : vector<4x1xf32>
      %72 = arith.addf %64, %69 : vector<4x1xf32>
      %73 = arith.addf %66, %65 : vector<4x1xf32>
      %74 = arith.addf %66, %67 : vector<4x1xf32>
      %75 = arith.addf %66, %69 : vector<4x1xf32>
      %76 = arith.addf %68, %65 : vector<4x1xf32>
      %77 = arith.addf %68, %67 : vector<4x1xf32>
      %78 = arith.addf %68, %69 : vector<4x1xf32>
      %79 = arith.subf %42, %71 : vector<4x1xf32>
      %80 = arith.mulf %79, %79 : vector<4x1xf32>
      %81 = arith.subf %48, %72 : vector<4x1xf32>
      %82 = arith.mulf %81, %81 : vector<4x1xf32>
      %83 = arith.addf %80, %82 : vector<4x1xf32>
      %84 = arith.subf %54, %75 : vector<4x1xf32>
      %85 = arith.mulf %84, %84 : vector<4x1xf32>
      %86 = arith.addf %83, %85 : vector<4x1xf32>
      %87 = arith.addf %86, %63 : vector<4x1xf32>
      %88 = arith.mulf %70, %70 : vector<4x1xf32>
      %89 = arith.mulf %74, %74 : vector<4x1xf32>
      %90 = arith.addf %88, %89 : vector<4x1xf32>
      %91 = arith.mulf %78, %78 : vector<4x1xf32>
      %92 = arith.addf %90, %91 : vector<4x1xf32>
      %93 = arith.subf %71, %73 : vector<4x1xf32>
      %94 = arith.mulf %93, %93 : vector<4x1xf32>
      %95 = arith.addf %92, %94 : vector<4x1xf32>
      %96 = arith.subf %72, %76 : vector<4x1xf32>
      %97 = arith.mulf %96, %96 : vector<4x1xf32>
      %98 = arith.addf %95, %97 : vector<4x1xf32>
      %99 = arith.subf %75, %77 : vector<4x1xf32>
      %100 = arith.mulf %99, %99 : vector<4x1xf32>
      %101 = arith.addf %98, %100 : vector<4x1xf32>
      %102 = vector.broadcast %19 : vector<1x1xf32> to vector<4x1xf32>
      %103 = arith.subf %102, %71 : vector<4x1xf32>
      %cst_33 = arith.constant 0.000000e+00 : f32
      %104 = vector.broadcast %cst_33 : f32 to vector<4x1xf32>
      %105 = arith.maximumf %103, %104 : vector<4x1xf32>
      %106 = arith.mulf %105, %105 : vector<4x1xf32>
      %107 = arith.addf %101, %106 : vector<4x1xf32>
      %108 = vector.broadcast %19 : vector<1x1xf32> to vector<4x1xf32>
      %109 = arith.subf %108, %72 : vector<4x1xf32>
      %cst_34 = arith.constant 0.000000e+00 : f32
      %110 = vector.broadcast %cst_34 : f32 to vector<4x1xf32>
      %111 = arith.maximumf %109, %110 : vector<4x1xf32>
      %112 = arith.mulf %111, %111 : vector<4x1xf32>
      %113 = arith.addf %107, %112 : vector<4x1xf32>
      %114 = vector.broadcast %19 : vector<1x1xf32> to vector<4x1xf32>
      %115 = arith.subf %114, %75 : vector<4x1xf32>
      %cst_35 = arith.constant 0.000000e+00 : f32
      %116 = vector.broadcast %cst_35 : f32 to vector<4x1xf32>
      %117 = arith.maximumf %115, %116 : vector<4x1xf32>
      %118 = arith.mulf %117, %117 : vector<4x1xf32>
      %119 = arith.addf %113, %118 : vector<4x1xf32>
      %120 = vector.broadcast %19 : vector<1x1xf32> to vector<4x1xf32>
      %121 = arith.subf %120, %73 : vector<4x1xf32>
      %cst_36 = arith.constant 0.000000e+00 : f32
      %122 = vector.broadcast %cst_36 : f32 to vector<4x1xf32>
      %123 = arith.maximumf %121, %122 : vector<4x1xf32>
      %124 = arith.mulf %123, %123 : vector<4x1xf32>
      %125 = arith.addf %119, %124 : vector<4x1xf32>
      %126 = vector.broadcast %19 : vector<1x1xf32> to vector<4x1xf32>
      %127 = arith.subf %126, %77 : vector<4x1xf32>
      %cst_37 = arith.constant 0.000000e+00 : f32
      %128 = vector.broadcast %cst_37 : f32 to vector<4x1xf32>
      %129 = arith.maximumf %127, %128 : vector<4x1xf32>
      %130 = arith.mulf %129, %129 : vector<4x1xf32>
      %131 = arith.addf %125, %130 : vector<4x1xf32>
      %132 = vector.broadcast %19 : vector<1x1xf32> to vector<4x1xf32>
      %133 = arith.subf %132, %76 : vector<4x1xf32>
      %cst_38 = arith.constant 0.000000e+00 : f32
      %134 = vector.broadcast %cst_38 : f32 to vector<4x1xf32>
      %135 = arith.maximumf %133, %134 : vector<4x1xf32>
      %136 = arith.mulf %135, %135 : vector<4x1xf32>
      %137 = arith.addf %131, %136 : vector<4x1xf32>
      %138 = arith.subf %72, %71 : vector<4x1xf32>
      %139 = arith.subf %138, %75 : vector<4x1xf32>
      %cst_39 = arith.constant 0.000000e+00 : f32
      %140 = vector.broadcast %cst_39 : f32 to vector<4x1xf32>
      %141 = arith.maximumf %139, %140 : vector<4x1xf32>
      %142 = arith.mulf %141, %141 : vector<4x1xf32>
      %143 = arith.addf %137, %142 : vector<4x1xf32>
      %144 = arith.subf %76, %77 : vector<4x1xf32>
      %145 = arith.subf %144, %73 : vector<4x1xf32>
      %cst_40 = arith.constant 0.000000e+00 : f32
      %146 = vector.broadcast %cst_40 : f32 to vector<4x1xf32>
      %147 = arith.maximumf %145, %146 : vector<4x1xf32>
      %148 = arith.mulf %147, %147 : vector<4x1xf32>
      %149 = arith.addf %143, %148 : vector<4x1xf32>
      %150 = arith.subf %75, %73 : vector<4x1xf32>
      %151 = arith.subf %150, %72 : vector<4x1xf32>
      %cst_41 = arith.constant 0.000000e+00 : f32
      %152 = vector.broadcast %cst_41 : f32 to vector<4x1xf32>
      %153 = arith.maximumf %151, %152 : vector<4x1xf32>
      %154 = arith.mulf %153, %153 : vector<4x1xf32>
      %155 = arith.addf %149, %154 : vector<4x1xf32>
      %156 = arith.subf %77, %76 : vector<4x1xf32>
      %157 = arith.subf %156, %71 : vector<4x1xf32>
      %cst_42 = arith.constant 0.000000e+00 : f32
      %158 = vector.broadcast %cst_42 : f32 to vector<4x1xf32>
      %159 = arith.maximumf %157, %158 : vector<4x1xf32>
      %160 = arith.mulf %159, %159 : vector<4x1xf32>
      %161 = arith.addf %155, %160 : vector<4x1xf32>
      %162 = arith.subf %71, %72 : vector<4x1xf32>
      %163 = arith.subf %162, %77 : vector<4x1xf32>
      %cst_43 = arith.constant 0.000000e+00 : f32
      %164 = vector.broadcast %cst_43 : f32 to vector<4x1xf32>
      %165 = arith.maximumf %163, %164 : vector<4x1xf32>
      %166 = arith.mulf %165, %165 : vector<4x1xf32>
      %167 = arith.addf %161, %166 : vector<4x1xf32>
      %168 = arith.subf %73, %75 : vector<4x1xf32>
      %169 = arith.subf %168, %76 : vector<4x1xf32>
      %cst_44 = arith.constant 0.000000e+00 : f32
      %170 = vector.broadcast %cst_44 : f32 to vector<4x1xf32>
      %171 = arith.maximumf %169, %170 : vector<4x1xf32>
      %172 = arith.mulf %171, %171 : vector<4x1xf32>
      %173 = arith.addf %167, %172 : vector<4x1xf32>
      %174 = vector.broadcast %20 : vector<1x1xf32> to vector<4x1xf32>
      %175 = arith.mulf %174, %173 : vector<4x1xf32>
      %176 = arith.addf %87, %175 : vector<4x1xf32>
      %177 = tpu.iota {dimensions = array<i32: 0>} : vector<4x1xi32>
      %c4_i32 = arith.constant 4 : i32
      %178 = arith.muli %arg0, %c4_i32 : i32
      %179 = vector.broadcast %178 : i32 to vector<4x1xi32>
      %180 = arith.addi %177, %179 : vector<4x1xi32>
      %c4_i32_45 = arith.constant 4 : i32
      %181 = vector.broadcast %c4_i32_45 : i32 to vector<4x1xi32>
      %182 = arith.cmpi slt, %180, %181 : vector<4x1xi32>
      %cst_46 = arith.constant 0.000000e+00 : f32
      %183 = vector.broadcast %cst_46 : f32 to vector<4x1xf32>
      %184 = arith.select %182, %176, %183 : vector<4x1xi1>, vector<4x1xf32>
      %185 = vector.shape_cast %184 : vector<4x1xf32> to vector<1x4x1xf32>
      %cst_47 = arith.constant dense<0.000000e+00> : vector<1xf32>
      %186 = vector.multi_reduction <add>, %185, %cst_47 [1, 2] : vector<1x4x1xf32> to vector<1xf32>
      %187 = vector.shape_cast %186 : vector<1xf32> to vector<1x1x1xf32>
      %188 = vector.extract %187[0, 0, 0] : f32 from vector<1x1x1xf32>
      %cst_48 = arith.constant 2.500000e-01 : f32
      %189 = arith.mulf %188, %cst_48 : f32
      %190 = vector.broadcast %189 : f32 to vector<1x1x128xf32>
      %c0_49 = arith.constant 0 : index
      %c0_50 = arith.constant 0 : index
      %c0_51 = arith.constant 0 : index
      %191 = vector.load %arg8[%c0_49, %c0_50, %c0_51] : memref<1x1x128xf32, #tpu.memory_space<vmem>>, vector<1x1x128xf32>
      tpu.vector_store %arg8[%c0_49, %c0_50, %c0_51], %190 {strides = array<i32>} : memref<1x1x128xf32, #tpu.memory_space<vmem>>, vector<1x1x128xf32>,
    } else {
    }
    return
  }
  func.func @transform_0(%arg0: i32, %arg1: i32) -> (i32, i32) {
    %c0_i32 = arith.constant 0 : i32
    %c0_i32_0 = arith.constant 0 : i32
    %c0_i32_1 = arith.constant 0 : i32
    return %c0_i32, %c0_i32_0 : i32, i32
  }
  func.func @transform_1(%arg0: i32, %arg1: i32) -> (i32, i32) {
    %c0_i32 = arith.constant 0 : i32
    return %arg0, %arg1 : i32, i32
  }
  func.func @transform_2(%arg0: i32, %arg1: i32) -> (i32, i32) {
    %c0_i32 = arith.constant 0 : i32
    return %arg0, %arg1 : i32, i32
  }
  func.func @transform_3(%arg0: i32, %arg1: i32) -> (i32, i32) {
    %c0_i32 = arith.constant 0 : i32
    return %arg0, %arg1 : i32, i32
  }
  func.func @transform_4(%arg0: i32, %arg1: i32) -> (i32, i32) {
    %c0_i32 = arith.constant 0 : i32
    %c0_i32_0 = arith.constant 0 : i32
    return %arg1, %c0_i32 : i32, i32
  }
  func.func @transform_5(%arg0: i32, %arg1: i32) -> (i32, i32) {
    %c0_i32 = arith.constant 0 : i32
    %c0_i32_0 = arith.constant 0 : i32
    %c0_i32_1 = arith.constant 0 : i32
    return %c0_i32, %c0_i32_0 : i32, i32
  }
  func.func @transform_6(%arg0: i32, %arg1: i32) -> (i32, i32, i32) {
    %c0_i32 = arith.constant 0 : i32
    %c0_i32_0 = arith.constant 0 : i32
    %c0_i32_1 = arith.constant 0 : i32
    return %arg0, %c0_i32, %c0_i32_0 : i32, i32, i32
  }
}

</mosaic_0001>

<bundles_post_ra>
// kernel: distance_loss_forward.1
= control target key start
LH: loop header
LB: loop body
LE: loop exit
PB: predicated region body
PF: predicated region fallthrough
CT: control target
= control target key end

     0   :  { %s866_s0 = inlined_call_operand.vmem [shape: f32[1,128], index: 0, kind: input, shape index: {}]   ;;  %s867_s1 = inlined_call_operand.vmem [shape: f32[4,256], index: 1, kind: input, shape index: {}]   ;;  %s868_s2 = inlined_call_operand.vmem [shape: f32[4,256], index: 2, kind: input, shape index: {}]   ;;  %s869_s3 = inlined_call_operand.vmem [shape: f32[4,256], index: 3, kind: input, shape index: {}]   ;;  %s870_s4 = inlined_call_operand.vmem [shape: bf16[256,128], index: 4, kind: input, shape index: {}]   ;;  %s871_s5 = inlined_call_operand.vmem [shape: f32[1,128], index: 5, kind: input, shape index: {}]   ;;  %s872_s6 = inlined_call_operand.hbm [shape: f32[1,1,128], index: 6, kind: output, shape index: {}]  }
   0x1   :  { %v594_v0 = vld [vmem:[%s870_s4 + $0x38] sm:$0xff]  ;;  %v689_v2 = vld [vmem:[%s870_s4 + $0x30] sm:$0xff]  ;;  %v24_v4 = vld [vmem:[%s867_s1] sm:$0xff] }
   0x2   :  { %v602_v1 = vld [vmem:[%s870_s4 + $0x78] sm:$0xff]  ;;  %179 = vmatpush.bf16.msra.mxu0 %v594_v0  ;;  %v694_v3 = vld [vmem:[%s870_s4 + $0x70] sm:$0xff]  ;;  %205 = vmatpush.bf16.msra.mxu2 %v594_v0  ;;  %v592_v5 = vld [vmem:[%s870_s4 + $0x28] sm:$0xff]  ;;  %26 = vst [vmem:[#allocation1] ss:$2 sm:$0xff] %v24_v4 }
   0x3   :  { %192 = vmatpush.bf16.msra.mxu1 %v602_v1  ;;  %218 = vmatpush.bf16.msra.mxu3 %v602_v1  ;;  %v600_v6 = vld [vmem:[%s870_s4 + $0x68] sm:$0xff] }
   0x6   :  { %180 = vmatpush.bf16.msra.mxu0 %v689_v2  ;;  %206 = vmatpush.bf16.msra.mxu2 %v689_v2 }
   0x7   :  { %193 = vmatpush.bf16.msra.mxu1 %v694_v3  ;;  %219 = vmatpush.bf16.msra.mxu3 %v694_v3 }
   0x8   :  { %11 = vsyncpa [#allocation6], 0  ;;  %v591_v7 = vld [vmem:[%s870_s4 + $0x20] sm:$0xff]  ;;  %v590_v12 = vld [vmem:[%s870_s4 + $0x18] sm:$0xff]  ;;  %s639_s9 = smov 127   ;;  %vm293_vm0 = vcmask 257024  }
   0x9   :  { %v599_v8 = vld [vmem:[%s870_s4 + $0x60] sm:$0xff]  ;;  %v28_v11 = vld.sshfl [vmem:[#allocation1 + $0x8] sm:$0xff pattern:$0x75316420]  ;;  %v598_v13 = vld [vmem:[%s870_s4 + $0x58] sm:$0xff]  ;;  %s642_s11 = smov 65  }
   0xa   :  { %181 = vmatpush.bf16.msra.mxu0 %v592_v5  ;;  %207 = vmatpush.bf16.msra.mxu2 %v592_v5  ;;  %v33_v9 = vld [vmem:[%s868_s2] sm:$0xff]  ;;  %v589_v14 = vld [vmem:[%s870_s4 + $0x10] sm:$0xff]  ;;  %v588_v19 = vld [vmem:[%s870_s4 + $0x8] sm:$0xff]  ;;  %v32_v24 = vpack.c.bf16 %v28_v11, %v28_v11  ;;  %s643_s12 = smov 63   ;;  %vm493_vm2 = vcmask 3072   ;;  %s644_s13 = smov [#allocation5]  }
   0xb   :  { %194 = vmatpush.bf16.msra.mxu1 %v600_v6  ;;  %220 = vmatpush.bf16.msra.mxu3 %v600_v6  ;;  %v27_v10 = vld.sshfl [vmem:[#allocation1] sm:$0xff pattern:$0x75316420]  ;;  %v597_v15 = vld [vmem:[%s870_s4 + $0x50] sm:$0xff]  ;;  %v596_v20 = vld [vmem:[%s870_s4 + $0x48] sm:$0xff]  ;;  %s512_s14 = sshll.u32 %s644_s13, 4  ;;  %s513_s14 = int_to_ptr.vmem [resolvable:$true] %s512_s14 }
   0xc   :  { %35 = vst [vmem:[#allocation1] ss:$2 sm:$0xff] %v33_v9  ;;  %v42_v16 = vld [vmem:[%s869_s3] sm:$0xff]  ;;  %v31_v23 = vpack.c.bf16 %v27_v10, %v27_v10  ;;  %s514_s17 = sshll.u32 %s872_s6, 4  ;;  %s515_s17 = int_to_ptr.hbm [resolvable:$true] %s514_s17 }
   0xd   :  { %v587_v21 = vld [vmem:[%s870_s4] sm:$0xff] }
   0xe   :  { %182 = vmatpush.bf16.msra.mxu0 %v591_v7  ;;  %208 = vmatpush.bf16.msra.mxu2 %v591_v7  ;;  %v595_v22 = vld [vmem:[%s870_s4 + $0x40] sm:$0xff] }
   0xf   :  { %195 = vmatpush.bf16.msra.mxu1 %v599_v8  ;;  %221 = vmatpush.bf16.msra.mxu3 %v599_v8  ;;  %v611_v36 = vld [vmem:[%s871_s5] ss:$0 sm:$0xff]  ;;  %s640_s5 = smov 64  }
  0x12   :  { %183 = vmatpush.bf16.msra.mxu0 %v590_v12  ;;  %209 = vmatpush.bf16.msra.mxu2 %v590_v12 }
  0x13   :  { %196 = vmatpush.bf16.msra.mxu1 %v598_v13  ;;  %222 = vmatpush.bf16.msra.mxu3 %v598_v13  ;;  %v36_v17 = vld.sshfl [vmem:[#allocation1] sm:$0xff pattern:$0x75316420]  ;;  %v37_v18 = vld.sshfl [vmem:[#allocation1 + $0x8] sm:$0xff pattern:$0x75316420] }
  0x14   :  { %44 = vst [vmem:[#allocation1] ss:$2 sm:$0xff] %v42_v16  ;;  %v40_v25 = vpack.c.bf16 %v36_v17, %v36_v17  ;;  %v41_v26 = vpack.c.bf16 %v37_v18, %v37_v18 }
  0x16   :  { %184 = vmatpush.bf16.msra.mxu0 %v589_v14  ;;  %210 = vmatpush.bf16.msra.mxu2 %v589_v14 }
  0x17   :  { %197 = vmatpush.bf16.msra.mxu1 %v597_v15  ;;  %223 = vmatpush.bf16.msra.mxu3 %v597_v15 }
  0x1a   :  { %185 = vmatpush.bf16.msra.mxu0 %v588_v19  ;;  %211 = vmatpush.bf16.msra.mxu2 %v588_v19 }
  0x1b   :  { %198 = vmatpush.bf16.msra.mxu1 %v596_v20  ;;  %224 = vmatpush.bf16.msra.mxu3 %v596_v20  ;;  %v45_v27 = vld.sshfl [vmem:[#allocation1] sm:$0xff pattern:$0x75316420]  ;;  %v46_v28 = vld.sshfl [vmem:[#allocation1 + $0x8] sm:$0xff pattern:$0x75316420] }
  0x1c   :  { %v49_v29 = vpack.c.bf16 %v45_v27, %v45_v27  ;;  %v50_v30 = vpack.c.bf16 %v46_v28, %v46_v28 }
  0x1e   :  { %186 = vmatpush.bf16.msra.mxu0 %v587_v21  ;;  %212 = vmatpush.bf16.msra.mxu2 %v587_v21 }
  0x1f   :  { %199 = vmatpush.bf16.msra.mxu1 %v595_v22  ;;  %225 = vmatpush.bf16.msra.mxu3 %v595_v22 }
  0x21   :  { %187 = vmatmul.bf16.vlgmr.msra.gmra.mxu0 %v31_v23  ;;  %213 = vmatmul.bf16.vlgmr.msra.gmra.mxu2 %v40_v25 }
  0x22   :  { %231 = vmatpush.bf16.msrb.mxu0 %v594_v0  ;;  %200 = vmatmul.bf16.vlgmr.msra.gmra.mxu1 %v32_v24 }
  0x23   :  { %244 = vmatpush.bf16.msrb.mxu1 %v602_v1  ;;  %226 = vmatmul.bf16.vlgmr.msra.gmra.mxu3 %v41_v26 }
  0x26   :  { %232 = vmatpush.bf16.msrb.mxu0 %v689_v2 }
  0x27   :  { %245 = vmatpush.bf16.msrb.mxu1 %v694_v3 }
  0x2a   :  { %233 = vmatpush.bf16.msrb.mxu0 %v592_v5 }
  0x2b   :  { %246 = vmatpush.bf16.msrb.mxu1 %v600_v6 }
  0x2e   :  { %234 = vmatpush.bf16.msrb.mxu0 %v591_v7 }
  0x2f   :  { %247 = vmatpush.bf16.msrb.mxu1 %v599_v8 }
  0x32   :  { %235 = vmatpush.bf16.msrb.mxu0 %v590_v12 }
  0x33   :  { %248 = vmatpush.bf16.msrb.mxu1 %v598_v13 }
  0x36   :  { %236 = vmatpush.bf16.msrb.mxu0 %v589_v14 }
  0x37   :  { %249 = vmatpush.bf16.msrb.mxu1 %v597_v15 }
  0x3a   :  { %237 = vmatpush.bf16.msrb.mxu0 %v588_v19 }
  0x3b   :  { %250 = vmatpush.bf16.msrb.mxu1 %v596_v20  ;;  %v813_v20 = vld [vmem:[%s866_s0] ss:$0 sm:$0xff]  ;;  %s641_s0 = smov 96  }
  0x3e   :  { %238 = vmatpush.bf16.msrb.mxu0 %v587_v21 }
  0x3f   :  { %251 = vmatpush.bf16.msrb.mxu1 %v595_v22 }
  0x41   :  { %239 = vmatmul.bf16.vlgmr.msrb.gmra.mxu0 %v49_v29 }
  0x42   :  { %252 = vmatmul.bf16.vlgmr.msrb.gmra.mxu1 %v50_v30 }
  0x9e   :  { %v188_v31 = vpop.f32.mrf.mxu0 }
  0x9f   :  { %v201_v32 = vpop.f32.mrf.mxu1 }
  0xa0   :  { %v202_v33 = vadd.f32 %v201_v32, %v188_v31 }
  0xa2   :  { %261 = vst [vmem:[#allocation2] sm:$0xf] %v202_v33 }
  0xa4   :  { %v214_v34 = vpop.f32.mrf.mxu2 }
  0xa6   :  { %v227_v35 = vpop.f32.mrf.mxu3  ;;  %v190_v38 = vpop.f32.mrf.mxu0 }
  0xa7   :  { %v228_v37 = vadd.f32 %v227_v35, %v214_v34  ;;  %v203_v39 = vpop.f32.mrf.mxu1 }
  0xa9   :  { %262 = vst [vmem:[#allocation3] sm:$0xf] %v228_v37  ;;  %v282_v40 = vld [vmem:[#allocation2] sm:$0xf] }
  0xaa   :  { %v750_v41 = vadd.f32 %v611_v36, %v282_v40 }
  0xac   :  { %324 = vrot.lane.b32.xlu1 %v750_v41, %s639_s9  ;;  %v216_v42 = vpop.f32.mrf.mxu2 }
  0xae   :  { %v229_v43 = vpop.f32.mrf.mxu3 }
  0xaf   :  { %v310_v43 = vmul.f32 %v750_v41, %v750_v41 }
  0xb0   :  { %v287_v44 = vld [vmem:[#allocation3] sm:$0xf] }
  0xb1   :  { %v753_v45 = vadd.f32 %v611_v36, %v287_v44 }
  0xb3   :  { %329 = vrot.lane.b32.xlu0 %v753_v45, %s639_s9  ;;  %v311_v44 = vmul.f32 %v753_v45, %v753_v45 }
  0xbe   :  { %v240_v46 = vpop.f32.mrf.mxu0 }
  0xbf   :  { %v253_v47 = vpop.f32.mrf.mxu1 }
  0xc0   :  { %v254_v48 = vadd.f32 %v253_v47, %v240_v46 }
  0xc2   :  { %263 = vst [vmem:[#allocation4] sm:$0xf] %v254_v48 }
  0xc6   :  { %v242_v49 = vpop.f32.mrf.mxu0 }
  0xc7   :  { %v255_v50 = vpop.f32.mrf.mxu1  ;;  %v312_v49 = vadd.f32 %v311_v44, %v310_v43 }
  0xc9   :  { %v289_v51 = vld [vmem:[#allocation4] sm:$0xf] }
  0xca   :  { %v756_v52 = vadd.f32 %v611_v36, %v289_v51 }
  0xcc   :  { %334 = vrot.lane.b32.xlu0 %v756_v52, %s639_s9  ;;  %v313_v47 = vmul.f32 %v756_v52, %v756_v52 }
  0xce   :  { %v314_v51 = vadd.f32 %v313_v47, %v312_v49 }
 0x11e   :  { %v325_v53 = vpop.permute.xlu1 %324 }
 0x11f   :  { %v760_v54 = vadd.f32 %v325_v53, %v753_v45  ;;  %v765_v56 = vadd.f32 %v325_v53, %v756_v52  ;;  %v327_v63 = vadd.f32 %v325_v53, %v750_v41  ;;  %v291_v53 = vsub.f32 %v750_v41, %v753_v45 }
 0x121   :  { %407 = vrot.lane.b32.xlu0 %v760_v54, %s640_s5  ;;  %v353_v1 = vmul.f32 %v327_v63, %v327_v63 }
 0x125   :  { %v330_v55 = vpop.permute.xlu0 %329 }
 0x126   :  { %v768_v57 = vadd.f32 %v330_v55, %v750_v41  ;;  %v771_v58 = vadd.f32 %v330_v55, %v756_v52  ;;  %v339_v62 = vadd.f32 %v330_v55, %v753_v45  ;;  %v298_v55 = vsub.f32 %v750_v41, %v756_v52 }
 0x128   :  { %371 = vrot.lane.b32.xlu1 %v768_v57, %s640_s5  ;;  %v447_v59 = vsub.f32 %v765_v56, %v771_v58  ;;  %v457_v60 = vsub.f32 %v771_v58, %v765_v56  ;;  %v354_v0 = vmul.f32 %v339_v62, %v339_v62  ;;  %v358_v6 = vsub.f32 %v768_v57, %v760_v54 }
 0x129   :  { %v299_v62 = vmul.f32 %v298_v55, %v298_v55 }
 0x12a   :  { %v780_v61 = vsub.f32 %v447_v59, %v760_v54  ;;  %v355_v7 = vadd.f32 %v354_v0, %v353_v1  ;;  %v359_v12 = vmul.f32 %v358_v6, %v358_v6  ;;  %v292_v59 = vmul.f32 %v291_v53, %v291_v53 }
 0x12b   :  { %v300_v0 = vsel %vm293_vm0, %v299_v62, 0.0  ;;  %v482_v62 = vlaneseq }
 0x12c   :  { %v294_v63 = vsel %vm293_vm0, %v292_v59, 0.0 }
 0x130   :  { %419 = vrot.lane.b32.xlu1 %v771_v58, %s640_s5 }
 0x13e   :  { %v335_v2 = vpop.permute.xlu0 %334 }
 0x13f   :  { %v787_v3 = vadd.f32 %v335_v2, %v750_v41  ;;  %v790_v4 = vadd.f32 %v335_v2, %v753_v45  ;;  %v343_v5 = vadd.f32 %v335_v2, %v756_v52 }
 0x141   :  { %v356_v8 = vmul.f32 %v343_v5, %v343_v5  ;;  %383 = vrot.lane.b32.xlu2 %v787_v3, %s640_s5  ;;  %v361_v9 = vsub.f32 %v787_v3, %v765_v56  ;;  %v467_v10 = vsub.f32 %v760_v54, %v790_v4  ;;  %v364_v13 = vsub.f32 %v790_v4, %v771_v58 }
 0x142   :  { %v442_v6 = vsub.f32 %v787_v3, %v768_v57  ;;  %v452_v41 = vsub.f32 %v790_v4, %v760_v54 }
 0x143   :  { %v357_v11 = vadd.f32 %v356_v8, %v355_v7  ;;  %v804_v14 = vsub.f32 %v467_v10, %v765_v56  ;;  %v362_v16 = vmul.f32 %v361_v9, %v361_v9  ;;  %v365_v18 = vmul.f32 %v364_v13, %v364_v13 }
 0x144   :  { %v443_v9 = vsub.f32 %v442_v6, %v790_v4 }
 0x145   :  { %v360_v15 = vadd.f32 %v359_v12, %v357_v11 }
 0x146   :  { %v444_v13 = vmax.f32 %v443_v9, 0.0 }
 0x147   :  { %v363_v17 = vadd.f32 %v362_v16, %v360_v15  ;;  %v453_v15 = vsub.f32 %v452_v41, %v787_v3  ;;  %v462_v16 = vsub.f32 %v768_v57, %v787_v3 }
 0x148   :  { %v445_v54 = vmul.f32 %v444_v13, %v444_v13 }
 0x149   :  { %395 = vrot.lane.b32.xlu2 %v790_v4, %s640_s5  ;;  %v366_v19 = vadd.f32 %v365_v18, %v363_v17 }
 0x151   :  { %431 = vrot.lane.b32.xlu2 %v765_v56, %s640_s5  ;;  %v469_v56 = vmax.f32 %v804_v14, 0.0 }
 0x193   :  { %v408_v25 = vpop.permute.xlu0 %407 }
 0x194   :  { %v410_v29 = vsub.f32 %v813_v20, %v408_v25  ;;  %v463_v25 = vsub.f32 %v462_v16, %v771_v58  ;;  %v304_v58 = vsub.f32 %v753_v45, %v756_v52 }
 0x196   :  { %v411_v34 = vmax.f32 %v410_v29, 0.0 }
 0x198   :  { %v412_v39 = vmul.f32 %v411_v34, %v411_v34 }
 0x19a   :  { %v372_v23 = vpop.permute.xlu1 %371 }
 0x19b   :  { %v384_v21 = vpop.permute.xlu2 %383  ;;  %v374_v24 = vsub.f32 %v813_v20, %v372_v23  ;;  %v454_v23 = vmax.f32 %v453_v15, 0.0 }
 0x19c   :  { %v386_v22 = vsub.f32 %v813_v20, %v384_v21  ;;  %v458_v21 = vsub.f32 %v457_v60, %v768_v57 }
 0x19d   :  { %v375_v27 = vmax.f32 %v374_v24, 0.0 }
 0x19e   :  { %v387_v26 = vmax.f32 %v386_v22, 0.0 }
 0x19f   :  { %v376_v30 = vmul.f32 %v375_v27, %v375_v27 }
 0x1a0   :  { %v388_v28 = vmul.f32 %v387_v26, %v387_v26 }
 0x1a1   :  { %378 = vrot.lane.b32.xlu0 %v376_v30, %s640_s5  ;;  %v455_v30 = vmul.f32 %v454_v23, %v454_v23 }
 0x1a2   :  { %390 = vrot.lane.b32.xlu1 %v388_v28, %s640_s5  ;;  %v420_v33 = vpop.permute.xlu1 %419  ;;  %v459_v28 = vmax.f32 %v458_v21, 0.0 }
 0x1a3   :  { %v396_v31 = vpop.permute.xlu2 %395  ;;  %v422_v35 = vsub.f32 %v813_v20, %v420_v33 }
 0x1a4   :  { %v398_v32 = vsub.f32 %v813_v20, %v396_v31  ;;  %v460_v34 = vmul.f32 %v459_v28, %v459_v28 }
 0x1a5   :  { %v423_v37 = vmax.f32 %v422_v35, 0.0 }
 0x1a6   :  { %v399_v36 = vmax.f32 %v398_v32, 0.0 }
 0x1a7   :  { %v424_v40 = vmul.f32 %v423_v37, %v423_v37  ;;  %v470_v37 = vmul.f32 %v469_v56, %v469_v56 }
 0x1a8   :  { %v400_v38 = vmul.f32 %v399_v36, %v399_v36 }
 0x1a9   :  { %414 = vrot.lane.b32.xlu0 %v412_v39, %s640_s5  ;;  %v305_v39 = vmul.f32 %v304_v58, %v304_v58 }
 0x1aa   :  { %402 = vrot.lane.b32.xlu2 %v400_v38, %s640_s5  ;;  %426 = vrot.lane.b32.xlu1 %v424_v40, %s640_s5 }
 0x1ab   :  { %v432_v42 = vpop.permute.xlu2 %431  ;;  %v306_v40 = vsel %vm293_vm0, %v305_v39, 0.0 }
 0x1ac   :  { %v434_v46 = vsub.f32 %v813_v20, %v432_v42 }
 0x1ae   :  { %v435_v48 = vmax.f32 %v434_v46, 0.0 }
 0x1b0   :  { %v436_v50 = vmul.f32 %v435_v48, %v435_v48 }
 0x1b1   :  { %316 = vrot.lane.b32.xlu0 %v314_v51, %s641_s0 }
 0x1b2   :  { %438 = vrot.lane.b32.xlu2 %v436_v50, %s640_s5 }
 0x1db   :  { %295 = vadd.xlane.f32.xlu2 %v294_v63  ;;  %301 = vadd.xlane.f32.xlu0 %v300_v0  ;;  %v483_v0 = vshrl.u32 %v482_v62, 7 }
 0x1dd   :  { %vm487_vm1 = vcmp.lt.s32.totalorder %v483_v0, 4 }
 0x204   :  { %v403_v7 = vpop.permute.xlu2 %402 }
 0x20c   :  { %v439_v22 = vpop.permute.xlu2 %438 }
 0x213   :  { %v379_v2 = vpop.permute.xlu0 %378 }
 0x214   :  { %v391_v1 = vpop.permute.xlu1 %390  ;;  %v381_v5 = vadd.f32 %v379_v2, %v366_v19  ;;  %v449_v19 = vmax.f32 %v780_v61, 0.0  ;;  %v464_v61 = vmax.f32 %v463_v25, 0.0 }
 0x216   :  { %v393_v8 = vadd.f32 %v391_v1, %v381_v5  ;;  %v450_v27 = vmul.f32 %v449_v19, %v449_v19  ;;  %v465_v35 = vmul.f32 %v464_v61, %v464_v61 }
 0x218   :  { %v405_v10 = vadd.f32 %v403_v7, %v393_v8 }
 0x21b   :  { %v415_v11 = vpop.permute.xlu0 %414 }
 0x21c   :  { %v417_v12 = vadd.f32 %v415_v11, %v405_v10  ;;  %v427_v17 = vpop.permute.xlu1 %426 }
 0x21e   :  { %v429_v18 = vadd.f32 %v427_v17, %v417_v12 }
 0x220   :  { %v441_v24 = vadd.f32 %v439_v22, %v429_v18 }
 0x222   :  { %v446_v26 = vadd.f32 %v445_v54, %v441_v24 }
 0x223   :  { %v317_v29 = vpop.permute.xlu0 %316 }
 0x224   :  { %v451_v31 = vadd.f32 %v450_v27, %v446_v26  ;;  %v319_v32 = vsel %vm293_vm0, %v317_v29, 0.0 }
 0x225   :  { %320 = vadd.xlane.f32.xlu2 %v319_v32 }
 0x226   :  { %v456_v33 = vadd.f32 %v455_v30, %v451_v31 }
 0x228   :  { %v461_v60 = vadd.f32 %v460_v34, %v456_v33 }
 0x22a   :  { %v466_v36 = vadd.f32 %v465_v35, %v461_v60 }
 0x22c   :  { %v471_v38 = vadd.f32 %v470_v37, %v466_v36 }
 0x22e   :  { %473 = vrot.lane.b32.xlu1 %v471_v38, %s642_s11 }
 0x24e   :  { %v302_v14 = vpop.xlane.xlu0 %301  ;;  %v296_v44 = vpop.xlane.xlu2 %295 }
 0x24f   :  { %v303_v47 = vmul.f32 0.03125, %v302_v14  ;;  %v297_v48 = vmul.f32 0.03125, %v296_v44 }
 0x251   :  { %v346_v50 = vsub.f32 %v303_v47, %v787_v3  ;;  %v344_v51 = vsub.f32 %v297_v48, %v768_v57 }
 0x253   :  { %v347_v52 = vmul.f32 %v346_v50, %v346_v50  ;;  %v345_v53 = vmul.f32 %v344_v51, %v344_v51 }
 0x258   :  { %307 = vadd.xlane.f32.xlu1 %v306_v40 }
 0x298   :  { %v321_v59 = vpop.xlane.xlu2 %320 }
 0x299   :  { %v322_v1 = vmul.f32 0.03125, %v321_v59 }
 0x2a0   :  { %v474_v42 = vpop.permute.xlu1 %473 }
 0x2a1   :  { %v476_v43 = vmul.f32 %v813_v20, %v474_v42  ;;  %v348_v20 = vadd.f32 %v347_v52, %v345_v53 }
 0x2a3   :  { %478 = vrot.lane.b32.xlu2 %v476_v43, %s643_s12 }
 0x2cb   :  { %v308_v46 = vpop.xlane.xlu1 %307 }
 0x2cc   :  { %v309_v49 = vmul.f32 0.03125, %v308_v46 }
 0x2ce   :  { %v349_v45 = vsub.f32 %v309_v49, %v790_v4 }
 0x2d0   :  { %v350_v55 = vmul.f32 %v349_v45, %v349_v45 }
 0x2d2   :  { %v351_v63 = vadd.f32 %v350_v55, %v348_v20 }
 0x2d4   :  { %v352_v2 = vadd.f32 %v351_v63, %v322_v1 }
 0x2fd   :  { %v479_v5 = vpop.permute.xlu2 %478 }
 0x2fe   :  { %v481_v6 = vadd.f32 %v479_v5, %v352_v2 }
 0x300   :  { %v488_v7 = vsel %vm487_vm1, %v481_v6, 0.0 }
 0x301   :  { %490 = vrot.lane.b32.xlu0 %v488_v7, %s640_s5 }
 0x373   :  { %v491_v57 = vpop.permute.xlu0 %490 }
 0x374   :  { %v494_v3 = vsel %vm493_vm2, %v491_v57, 0.0 }
 0x375   :  { %495 = vadd.xlane.f32.xlu1 %v494_v3 }
 0x3e8   :  { %v496_v4 = vpop.xlane.xlu1 %495 }
 0x3e9   :  { %v497_v8 = vrot.slane %v496_v4, 4 }
 0x3eb   :  { %v498_v9 = vadd.f32 %v497_v8, %v496_v4 }
 0x3ed   :  { %v499_v41 = vrot.slane %v498_v9, 2 }
 0x3ef   :  { %v500_v10 = vadd.f32 %v499_v41, %v498_v9 }
 0x3f1   :  { %v501_v11 = vrot.slane %v500_v10, 1 }
 0x3f3   :  { %v502_v12 = vadd.f32 %v501_v11, %v500_v10 }
 0x3f5   :  { %603 = vpush %v502_v12 }
 0x426   :  { %s604_s18 = spop %603 }
 0x427   :  { %s504_s19 = smul.f32 0.25, %s604_s18 }
 0x429   :  { %v505_v13 = vstv %s504_s19 }
 0x42a   :  { %506 = vst [vmem:[#allocation5] sm:$0x1] %v505_v13 }
 0x42b   :  { %517 = dma.vmem_to_hbm [thread:$0]  %s513_s14, 16, %s515_s17, [#allocation6]  }
 0x42c   :  { %637 = dma.done.wait [#allocation6], 16  }
 0x42d   :  { %638 = vsyncadd [#allocation6], 4294967280 }
 0x42e   :  { %522 = vsyncpa [#allocation6], 1 }

</bundles_post_ra>
